<compile_context>
chip_gen: v5e
topology: v5e:2x2
jax: 0.10.0
libtpu: 0.0.40
codegen_flags: <defaults>
</compile_context>

<pallas_src>
import functools
import math

import jax
import jax.numpy as jnp
from jax.experimental import pallas as pl
from jax.experimental.pallas import tpu as pltpu


def _linear_clamp_kernel(x_ref, wt_ref, b_ref, o_ref, *, min_value, max_value):
    """One M-tile of  y = clamp(x @ W.T + b, min_value, max_value).

    x_ref  : VMEM (TM, K)  input rows in natural layout
    wt_ref : VMEM (K, N)   transposed nn.Linear weight (resident, tiny)
    b_ref  : VMEM (1, N)   bias
    o_ref  : VMEM (TM, N)  output rows
    """
    x = x_ref[...]                                           # (TM, K)
    wt = wt_ref[...]                                         # (K, N)
    # MXU contraction; VPU is left with only bias-add + clamps.
    y = jnp.dot(x, wt, preferred_element_type=jnp.float32)   # (TM, N) f32
    y = y + b_ref[...]                                       # broadcast (1, N)
    y = jnp.maximum(y, min_value)                             # clamp_min
    y = jnp.minimum(y, max_value)                             # clamp_max
    o_ref[...] = y.astype(o_ref.dtype)                        # single full-tile store


def linear_clamp(x, weight, bias, min_value, max_value, *, tm_max=16384):
    """x: (..., K); weight: (N, K); bias: (N,). Returns clamp(x @ W.T + b, lo, hi)."""
    orig_shape = x.shape
    k = orig_shape[-1]
    n = weight.shape[0]
    m = int(math.prod(orig_shape[:-1]))

    # Free reshape: leading dims flattened, natural (M, K) row-major layout.
    x2d = x.reshape(m, k)
    # Tiny (K*N + N elements) preprocessing — negligible vs the M-sized operand.
    wt = jnp.transpose(weight).astype(x.dtype)        # (K, N)
    b2d = bias.reshape(1, n).astype(jnp.float32)      # (1, N)

    # Pick an M tile: multiple of 8 sublanes, balanced across the grid,
    # capped so double-buffered (TM, 128-lane-padded) in+out stays ~32 MiB.
    num_blocks = max(1, pl.cdiv(m, tm_max))
    tm = ((pl.cdiv(m, num_blocks) + 7) // 8) * 8
    tm = max(8, tm)
    grid = (pl.cdiv(m, tm),)   # last block may be padded; OOB writes are masked

    kernel = functools.partial(
        _linear_clamp_kernel,
        min_value=float(min_value), max_value=float(max_value))

    out = pl.pallas_call(
        kernel,
        out_shape=jax.ShapeDtypeStruct((m, n), x.dtype),
        grid=grid,
        in_specs=[
            pl.BlockSpec((tm, k), lambda i: (i, 0)),   # x tile, natural layout
            pl.BlockSpec((k, n), lambda i: (0, 0)),    # W.T, resident tiny tile
            pl.BlockSpec((1, n), lambda i: (0, 0)),    # bias
        ],
        out_specs=pl.BlockSpec((tm, n), lambda i: (i, 0)),
        compiler_params=pltpu.CompilerParams(
            dimension_semantics=("parallel",),
            vmem_limit_bytes=48 * 1024 * 1024),
    )(x2d, wt, b2d)

    return out.reshape(orig_shape[:-1] + (n,))


if __name__ == "__main__":
    key = jax.random.PRNGKey(0)
    kx, kw, kb = jax.random.split(key, 3)

    in_features, out_features = 5, 3
    min_value, max_value = 1.0, 1.0       # module-level constants from the spec

    # Small input consistent with the forward pass (last dim = in_features).
    x = jax.random.normal(kx, (2, 4, 16, in_features), dtype=jnp.float32)

    # Deterministic nn.Linear-style init: U(-1/sqrt(in), 1/sqrt(in)).
    bound = 1.0 / math.sqrt(in_features)
    weight = jax.random.uniform(kw, (out_features, in_features),
                                minval=-bound, maxval=bound, dtype=jnp.float32)
    bias = jax.random.uniform(kb, (out_features,),
                              minval=-bound, maxval=bound, dtype=jnp.float32)

    def ref_fn(xv, wv, bv, lo, hi):
        return jnp.minimum(jnp.maximum(xv @ wv.T + bv, lo), hi)

    # 1) Module configuration (min == max == 1  =>  output identically 1).
    out = linear_clamp(x, weight, bias, min_value, max_value)
    jax.block_until_ready(out)
    assert out.shape == (2, 4, 16, out_features)
    assert jnp.allclose(out, ref_fn(x, weight, bias, min_value, max_value),
                        atol=1e-5), "mismatch vs reference (min=max=1)"

    # 2) Also exercise the general clamp path with distinct min/max so the
    #    linear + clamp kernel is verified numerically, not just constant-1.
    out2 = linear_clamp(x, weight, bias, -0.25, 0.75)
    jax.block_until_ready(out2)
    assert jnp.allclose(out2, ref_fn(x, weight, bias, -0.25, 0.75),
                        atol=1e-5), "mismatch vs reference (general clamps)"

    print("KERNEL_OK")
</pallas_src>

<mosaic_0001>
module attributes {stable_mosaic.version = 11 : i64} {
  func.func @_linear_clamp_kernel(%arg0: i32, %arg1: memref<128x5xf32, #tpu.memory_space<vmem>>, %arg2: memref<5x3xf32, #tpu.memory_space<vmem>>, %arg3: memref<1x3xf32, #tpu.memory_space<vmem>>, %arg4: memref<128x3xf32, #tpu.memory_space<vmem>>) attributes {dimension_semantics = [#tpu.dimension_semantics<parallel>], iteration_bounds = array<i64: 1>, scalar_prefetch = 0 : i64, scratch_operands = 0 : i64, tpu.core_type = #tpu.core_type<tc>, window_params = [{transform_indices = @transform_0, window_bounds = array<i64: 128, 5>}, {pipeline_mode = #tpu.pipeline_mode<synchronous>, transform_indices = @transform_1, window_bounds = array<i64: 5, 3>}, {pipeline_mode = #tpu.pipeline_mode<synchronous>, transform_indices = @transform_2, window_bounds = array<i64: 1, 3>}, {transform_indices = @transform_3, window_bounds = array<i64: 128, 3>}]} {
    %c0 = arith.constant 0 : index
    %c0_0 = arith.constant 0 : index
    %0 = vector.load %arg1[%c0, %c0_0] : memref<128x5xf32, #tpu.memory_space<vmem>>, vector<128x5xf32>
    %c0_1 = arith.constant 0 : index
    %c0_2 = arith.constant 0 : index
    %1 = vector.load %arg2[%c0_1, %c0_2] : memref<5x3xf32, #tpu.memory_space<vmem>>, vector<5x3xf32>
    %cst = arith.constant dense<0.000000e+00> : vector<128x3xf32>
    %2 = tpu.matmul %0, %1, %cst {dimension_numbers = #tpu.dot_dimension_numbers<[1], [0], [0], [1], [0, 0, 1, 1], [], []>} : vector<128x5xf32>, vector<5x3xf32>, vector<128x3xf32> -> vector<128x3xf32>
    %c0_3 = arith.constant 0 : index
    %c0_4 = arith.constant 0 : index
    %3 = vector.load %arg3[%c0_3, %c0_4] : memref<1x3xf32, #tpu.memory_space<vmem>>, vector<1x3xf32>
    %4 = vector.broadcast %3 : vector<1x3xf32> to vector<128x3xf32>
    %5 = arith.addf %2, %4 : vector<128x3xf32>
    %cst_5 = arith.constant 1.000000e+00 : f32
    %6 = vector.broadcast %cst_5 : f32 to vector<128x3xf32>
    %7 = arith.maximumf %5, %6 : vector<128x3xf32>
    %cst_6 = arith.constant 1.000000e+00 : f32
    %8 = vector.broadcast %cst_6 : f32 to vector<128x3xf32>
    %9 = arith.minimumf %7, %8 : vector<128x3xf32>
    %c0_7 = arith.constant 0 : index
    %c0_8 = arith.constant 0 : index
    %10 = vector.load %arg4[%c0_7, %c0_8] : memref<128x3xf32, #tpu.memory_space<vmem>>, vector<128x3xf32>
    tpu.vector_store %arg4[%c0_7, %c0_8], %9 {strides = array<i32>} : memref<128x3xf32, #tpu.memory_space<vmem>>, vector<128x3xf32>,
    return
  }
  func.func @transform_0(%arg0: i32) -> (i32, i32) {
    %c0_i32 = arith.constant 0 : i32
    %c0_i32_0 = arith.constant 0 : i32
    return %arg0, %c0_i32 : i32, i32
  }
  func.func @transform_1(%arg0: i32) -> (i32, i32) {
    %c0_i32 = arith.constant 0 : i32
    %c0_i32_0 = arith.constant 0 : i32
    %c0_i32_1 = arith.constant 0 : i32
    return %c0_i32, %c0_i32_0 : i32, i32
  }
  func.func @transform_2(%arg0: i32) -> (i32, i32) {
    %c0_i32 = arith.constant 0 : i32
    %c0_i32_0 = arith.constant 0 : i32
    %c0_i32_1 = arith.constant 0 : i32
    return %c0_i32, %c0_i32_0 : i32, i32
  }
  func.func @transform_3(%arg0: i32) -> (i32, i32) {
    %c0_i32 = arith.constant 0 : i32
    %c0_i32_0 = arith.constant 0 : i32
    return %arg0, %c0_i32 : i32, i32
  }
}

</mosaic_0001>

<bundles_post_ra>
// kernel: tpu_custom_call.1
= control target key start
LH: loop header
LB: loop body
LE: loop exit
PB: predicated region body
PF: predicated region fallthrough
CT: control target
= control target key end

     0   :  { %vm84_vm0 = vcmask 1044480   ;;  %vm35_vm1 = vcmask 39936   ;;  %vm185_vm2 = vcmask 23552   ;;  %s399_s1 = inlined_call_operand.vmem [shape: f32[5,3], index: 1, kind: input, shape index: {}]   ;;  %s400_s0 = inlined_call_operand.vmem [shape: f32[128,5], index: 0, kind: input, shape index: {}]   ;;  %s401_s2 = inlined_call_operand.vmem [shape: f32[1,3], index: 2, kind: input, shape index: {}]   ;;  %s402_s3 = inlined_call_operand.vmem [shape: f32[128,3], index: 3, kind: output, shape index: {}]  }
   0x1   :  { %v30_v0 = vld [vmem:[%s399_s1] sm:$0x1f]  ;;  %v23_v5 = vld [vmem:[%s400_s0 + $0x48] sm:$0xff]  ;;  %v24_v9 = vld [vmem:[%s400_s0 + $0x50] sm:$0xff] }
   0x2   :  { %v22_v1 = vld [vmem:[%s400_s0 + $0x40] sm:$0xff]  ;;  %224 = vmatpush.msk.msra.mxu2 %vm84_vm0, %v30_v0  ;;  %225 = vmatpush.msk.msra.mxu3 %vm84_vm0, %v30_v0  ;;  %v27_v6 = vld [vmem:[%s400_s0 + $0x68] sm:$0xff]  ;;  %v28_v10 = vld [vmem:[%s400_s0 + $0x70] sm:$0xff] }
   0x3   :  { %v26_v2 = vld [vmem:[%s400_s0 + $0x60] sm:$0xff]  ;;  %215 = vmatmul.msk.f32.vlgmr.msra.gmra.mxu2 %vm35_vm1, %v22_v1  ;;  %206 = vmatpush.msk.msra.mxu0 %vm84_vm0, %v30_v0  ;;  %v15_v7 = vld [vmem:[%s400_s0 + $0x8] sm:$0xff]  ;;  %v16_v11 = vld [vmem:[%s400_s0 + $0x10] sm:$0xff] }
   0x4   :  { %v14_v3 = vld [vmem:[%s400_s0] sm:$0xff]  ;;  %219 = vmatmul.msk.f32.vlgmr.msra.gmra.mxu3 %vm35_vm1, %v26_v2  ;;  %223 = vmatpush.msk.msra.mxu1 %vm84_vm0, %v30_v0  ;;  %v19_v8 = vld [vmem:[%s400_s0 + $0x28] sm:$0xff]  ;;  %v20_v12 = vld [vmem:[%s400_s0 + $0x30] sm:$0xff] }
   0x5   :  { %v18_v4 = vld [vmem:[%s400_s0 + $0x20] sm:$0xff]  ;;  %207 = vmatmul.msk.f32.vlgmr.msra.gmra.mxu0 %vm35_vm1, %v14_v3  ;;  %v25_v13 = vld [vmem:[%s400_s0 + $0x58] sm:$0xff] }
   0x6   :  { %211 = vmatmul.msk.f32.vlgmr.msra.gmra.mxu1 %vm35_vm1, %v18_v4  ;;  %v29_v14 = vld [vmem:[%s400_s0 + $0x78] sm:$0xff]  ;;  %v317_v17 = vld [vmem:[%s401_s2] ss:$0 sm:$0xff] }
   0x7   :  { %v17_v15 = vld [vmem:[%s400_s0 + $0x18] sm:$0xff] }
   0x8   :  { %v21_v16 = vld [vmem:[%s400_s0 + $0x38] sm:$0xff] }
   0xb   :  { %216 = vmatmul.msk.f32.gmra.mxu2 %vm35_vm1, %v23_v5 }
   0xc   :  { %220 = vmatmul.msk.f32.gmra.mxu3 %vm35_vm1, %v27_v6 }
   0xd   :  { %208 = vmatmul.msk.f32.gmra.mxu0 %vm35_vm1, %v15_v7 }
   0xe   :  { %212 = vmatmul.msk.f32.gmra.mxu1 %vm35_vm1, %v19_v8 }
  0x13   :  { %217 = vmatmul.msk.f32.gmra.mxu2 %vm35_vm1, %v24_v9 }
  0x14   :  { %221 = vmatmul.msk.f32.gmra.mxu3 %vm35_vm1, %v28_v10 }
  0x15   :  { %209 = vmatmul.msk.f32.gmra.mxu0 %vm35_vm1, %v16_v11 }
  0x16   :  { %213 = vmatmul.msk.f32.gmra.mxu1 %vm35_vm1, %v20_v12 }
  0x1b   :  { %218 = vmatmul.msk.f32.gmra.mxu2 %vm35_vm1, %v25_v13 }
  0x1c   :  { %222 = vmatmul.msk.f32.gmra.mxu3 %vm35_vm1, %v29_v14 }
  0x1d   :  { %210 = vmatmul.msk.f32.gmra.mxu0 %vm35_vm1, %v17_v15 }
  0x1e   :  { %214 = vmatmul.msk.f32.gmra.mxu1 %vm35_vm1, %v21_v16 }
  0x82   :  { %v105_v18 = vpop.f32.mrf.mxu0 }
  0x83   :  { %v117_v19 = vpop.f32.mrf.mxu1  ;;  %v106_v20 = vadd.f32 %v317_v17, %v105_v18 }
  0x84   :  { %v118_v21 = vadd.f32 %v317_v17, %v117_v19 }
  0x85   :  { %v153_v22 = vmax.f32 %v106_v20, 1.0 }
  0x86   :  { %v157_v23 = vmax.f32 %v118_v21, 1.0  ;;  %v129_v24 = vpop.f32.mrf.mxu2 }
  0x87   :  { %v141_v25 = vpop.f32.mrf.mxu3  ;;  %v169_v26 = vmin.f32 %v153_v22, 1.0  ;;  %v130_v28 = vadd.f32 %v317_v17, %v129_v24 }
  0x88   :  { %v173_v27 = vmin.f32 %v157_v23, 1.0  ;;  %v142_v29 = vadd.f32 %v317_v17, %v141_v25 }
  0x89   :  { %186 = vst.msk [vmem:[%s402_s3] sm:$0xff] %vm185_vm2, %v169_v26  ;;  %v161_v30 = vmax.f32 %v130_v28, 1.0 }
  0x8a   :  { %v165_v31 = vmax.f32 %v142_v29, 1.0  ;;  %190 = vst.msk [vmem:[%s402_s3 + $0x20] sm:$0xff] %vm185_vm2, %v173_v27  ;;  %v108_v32 = vpop.f32.mrf.mxu0 }
  0x8b   :  { %v120_v33 = vpop.f32.mrf.mxu1  ;;  %v177_v34 = vmin.f32 %v161_v30, 1.0  ;;  %v109_v36 = vadd.f32 %v317_v17, %v108_v32 }
  0x8c   :  { %v181_v35 = vmin.f32 %v165_v31, 1.0  ;;  %v121_v37 = vadd.f32 %v317_v17, %v120_v33 }
  0x8d   :  { %194 = vst.msk [vmem:[%s402_s3 + $0x40] sm:$0xff] %vm185_vm2, %v177_v34  ;;  %v154_v38 = vmax.f32 %v109_v36, 1.0 }
  0x8e   :  { %v158_v39 = vmax.f32 %v121_v37, 1.0  ;;  %198 = vst.msk [vmem:[%s402_s3 + $0x60] sm:$0xff] %vm185_vm2, %v181_v35  ;;  %v132_v40 = vpop.f32.mrf.mxu2 }
  0x8f   :  { %v144_v41 = vpop.f32.mrf.mxu3  ;;  %v170_v42 = vmin.f32 %v154_v38, 1.0  ;;  %v133_v44 = vadd.f32 %v317_v17, %v132_v40 }
  0x90   :  { %v174_v43 = vmin.f32 %v158_v39, 1.0  ;;  %v145_v45 = vadd.f32 %v317_v17, %v144_v41 }
  0x91   :  { %187 = vst.msk [vmem:[%s402_s3 + $0x8] sm:$0xff] %vm185_vm2, %v170_v42  ;;  %v162_v46 = vmax.f32 %v133_v44, 1.0 }
  0x92   :  { %v166_v47 = vmax.f32 %v145_v45, 1.0  ;;  %191 = vst.msk [vmem:[%s402_s3 + $0x28] sm:$0xff] %vm185_vm2, %v174_v43  ;;  %v111_v48 = vpop.f32.mrf.mxu0 }
  0x93   :  { %v123_v49 = vpop.f32.mrf.mxu1  ;;  %v178_v50 = vmin.f32 %v162_v46, 1.0  ;;  %v112_v52 = vadd.f32 %v317_v17, %v111_v48 }
  0x94   :  { %v182_v51 = vmin.f32 %v166_v47, 1.0  ;;  %v124_v53 = vadd.f32 %v317_v17, %v123_v49 }
  0x95   :  { %195 = vst.msk [vmem:[%s402_s3 + $0x48] sm:$0xff] %vm185_vm2, %v178_v50  ;;  %v155_v54 = vmax.f32 %v112_v52, 1.0 }
  0x96   :  { %v159_v55 = vmax.f32 %v124_v53, 1.0  ;;  %199 = vst.msk [vmem:[%s402_s3 + $0x68] sm:$0xff] %vm185_vm2, %v182_v51  ;;  %v135_v56 = vpop.f32.mrf.mxu2 }
  0x97   :  { %v147_v57 = vpop.f32.mrf.mxu3  ;;  %v171_v58 = vmin.f32 %v155_v54, 1.0  ;;  %v136_v60 = vadd.f32 %v317_v17, %v135_v56 }
  0x98   :  { %v175_v59 = vmin.f32 %v159_v55, 1.0  ;;  %v148_v61 = vadd.f32 %v317_v17, %v147_v57 }
  0x99   :  { %188 = vst.msk [vmem:[%s402_s3 + $0x10] sm:$0xff] %vm185_vm2, %v171_v58  ;;  %v163_v62 = vmax.f32 %v136_v60, 1.0 }
  0x9a   :  { %v167_v63 = vmax.f32 %v148_v61, 1.0  ;;  %192 = vst.msk [vmem:[%s402_s3 + $0x30] sm:$0xff] %vm185_vm2, %v175_v59  ;;  %v114_v0 = vpop.f32.mrf.mxu0 }
  0x9b   :  { %v126_v1 = vpop.f32.mrf.mxu1  ;;  %v179_v2 = vmin.f32 %v163_v62, 1.0  ;;  %v115_v4 = vadd.f32 %v317_v17, %v114_v0 }
  0x9c   :  { %v183_v3 = vmin.f32 %v167_v63, 1.0  ;;  %v127_v5 = vadd.f32 %v317_v17, %v126_v1 }
  0x9d   :  { %196 = vst.msk [vmem:[%s402_s3 + $0x50] sm:$0xff] %vm185_vm2, %v179_v2  ;;  %v156_v6 = vmax.f32 %v115_v4, 1.0 }
  0x9e   :  { %v160_v7 = vmax.f32 %v127_v5, 1.0  ;;  %200 = vst.msk [vmem:[%s402_s3 + $0x70] sm:$0xff] %vm185_vm2, %v183_v3  ;;  %v138_v8 = vpop.f32.mrf.mxu2 }
  0x9f   :  { %v150_v9 = vpop.f32.mrf.mxu3  ;;  %v172_v10 = vmin.f32 %v156_v6, 1.0  ;;  %v139_v12 = vadd.f32 %v317_v17, %v138_v8 }
  0xa0   :  { %v176_v11 = vmin.f32 %v160_v7, 1.0  ;;  %v151_v13 = vadd.f32 %v317_v17, %v150_v9 }
  0xa1   :  { %189 = vst.msk [vmem:[%s402_s3 + $0x18] sm:$0xff] %vm185_vm2, %v172_v10  ;;  %v164_v14 = vmax.f32 %v139_v12, 1.0 }
  0xa2   :  { %v168_v15 = vmax.f32 %v151_v13, 1.0  ;;  %193 = vst.msk [vmem:[%s402_s3 + $0x38] sm:$0xff] %vm185_vm2, %v176_v11 }
  0xa3   :  { %v180_v16 = vmin.f32 %v164_v14, 1.0 }
  0xa4   :  { %v184_v18 = vmin.f32 %v168_v15, 1.0 }
  0xa5   :  { %197 = vst.msk [vmem:[%s402_s3 + $0x58] sm:$0xff] %vm185_vm2, %v180_v16 }
  0xa6   :  { %201 = vst.msk [vmem:[%s402_s3 + $0x78] sm:$0xff] %vm185_vm2, %v184_v18 }

</bundles_post_ra>
